<compile_context>
chip_gen: v5e
topology: v5e:2x2
jax: 0.10.0
libtpu: 0.0.40
codegen_flags: <defaults>
</compile_context>

<pallas_src>
import jax
import jax.numpy as jnp
from jax.experimental import pallas as pl
from jax.experimental.pallas import tpu as pltpu


def _round_up(n, m):
    return ((n + m - 1) // m) * m


def rnn_kernel(x_ref, w_ih_ref, w_hh_ref, b_h_ref, w_fc_ref, b_fc_ref,
               out_ref, h_ref, xproj_ref):
    # Grid: (batch blocks [parallel], time blocks [arbitrary/sequential]).
    t = pl.program_id(1)

    @pl.when(t == 0)
    def _():
        h_ref[...] = jnp.zeros_like(h_ref)

    Tt, Bt, Ip = x_ref.shape          # (time_tile, B_tile, I_pad)
    Hp = w_hh_ref.shape[0]

    # One big MXU input projection for the whole time tile, bias folded in once.
    # Materialized into a VMEM scratch so the unrolled recurrence below only
    # keeps one (Bt, Hp) slice live at a time (bounds register pressure).
    xproj_ref[...] = (
        jnp.dot(x_ref[...].reshape(Tt * Bt, Ip), w_ih_ref[...],
                preferred_element_type=jnp.float32)
        + b_h_ref[...]
    ).reshape(Tt, Bt, Hp)

    # Sequential tanh recurrence across the tile.  Static Python range == full
    # unroll; each step is a single (Bt,Hp)@(Hp,Hp) MXU matmul + EUP tanh.
    h = h_ref[...]
    for i in range(Tt):
        h = jnp.tanh(xproj_ref[i] +
                     jnp.dot(h, w_hh_ref[...],
                             preferred_element_type=jnp.float32))
    h_ref[...] = h  # persist the carry across time-grid steps

    # Linear head on the last hidden state, lane-dense (B_tile, O_pad) store.
    @pl.when(t == pl.num_programs(1) - 1)
    def _():
        out_ref[...] = (
            jnp.dot(h, w_fc_ref[...], preferred_element_type=jnp.float32)
            + b_fc_ref[...]
        ).astype(out_ref.dtype)


def simple_rnn_forward(x, w_ih, w_hh, b_ih, b_hh, w_fc, b_fc, *,
                       t_tile=None, b_tile=None):
    """x: (B, T, I); W_ih: (H, I); W_hh: (H, H); W_fc: (O, H); biases (1, H)/(1, O)."""
    B, T, I = x.shape
    H = w_hh.shape[0]
    O = w_fc.shape[0]

    # vreg-aligned padded dims: sublanes of 8 for batch, lanes of 128 elsewhere.
    Bp0 = _round_up(B, 8)
    Ip = _round_up(I, 128)
    Hp = _round_up(H, 128)
    Op = _round_up(O, 128)

    if b_tile is None:
        b_tile = min(Bp0, 128)            # up to 128 rows per MXU pass
    b_tile = _round_up(b_tile, 8)
    Bp = _round_up(Bp0, b_tile)

    if t_tile is None:
        # Largest divisor of T (from a small candidate set) whose x tile stays
        # under ~2 MiB (the pipeline double-buffers it).
        budget = 2 * 1024 * 1024
        t_tile = 1
        for cand in (64, 32, 16, 8, 4, 2, 1):
            if T % cand == 0 and cand * b_tile * Ip * 4 <= budget:
                t_tile = cand
                break
    assert T % t_tile == 0, "t_tile must divide the sequence length"

    f32 = jnp.float32
    # Time-major, zero-padded activations.
    x_tm = jnp.transpose(x, (1, 0, 2)).astype(f32)                       # (T, B, I)
    x_p = jnp.zeros((T, Bp, Ip), f32).at[:, :B, :I].set(x_tm)

    # Pre-transposed, zero-padded weights (padding keeps the math exact: padded
    # hidden lanes stay identically zero through the recurrence).
    w_ih_t = jnp.zeros((Ip, Hp), f32).at[:I, :H].set(w_ih.astype(f32).T)
    w_hh_t = jnp.zeros((Hp, Hp), f32).at[:H, :H].set(w_hh.astype(f32).T)
    w_fc_t = jnp.zeros((Hp, Op), f32).at[:H, :O].set(w_fc.astype(f32).T)
    b_h = jnp.zeros((1, Hp), f32).at[:, :H].set(
        b_ih.astype(f32) + b_hh.astype(f32))
    b_fc_p = jnp.zeros((1, Op), f32).at[:, :O].set(b_fc.astype(f32))

    grid = (Bp // b_tile, T // t_tile)

    out_p = pl.pallas_call(
        rnn_kernel,
        out_shape=jax.ShapeDtypeStruct((Bp, Op), f32),
        grid_spec=pltpu.PrefetchScalarGridSpec(
            num_scalar_prefetch=0,
            grid=grid,
            in_specs=[
                pl.BlockSpec((t_tile, b_tile, Ip), lambda b, t: (t, b, 0)),
                pl.BlockSpec((Ip, Hp), lambda b, t: (0, 0)),
                pl.BlockSpec((Hp, Hp), lambda b, t: (0, 0)),
                pl.BlockSpec((1, Hp), lambda b, t: (0, 0)),
                pl.BlockSpec((Hp, Op), lambda b, t: (0, 0)),
                pl.BlockSpec((1, Op), lambda b, t: (0, 0)),
            ],
            out_specs=pl.BlockSpec((b_tile, Op), lambda b, t: (b, 0)),
            scratch_shapes=[
                pltpu.VMEM((b_tile, Hp), f32),           # hidden-state carry
                pltpu.VMEM((t_tile, b_tile, Hp), f32),   # per-tile input projection
            ],
        ),
        compiler_params=pltpu.CompilerParams(
            dimension_semantics=("parallel", "arbitrary")),
    )(x_p, w_ih_t, w_hh_t, b_h, w_fc_t, b_fc_p)

    return out_p[:B, :O].astype(x.dtype)


def reference_forward(x, w_ih, w_hh, b_ih, b_hh, w_fc, b_fc):
    """Pure-JAX reference (mirrors torch nn.RNN(batch_first=True) + nn.Linear)."""
    B, T, I = x.shape
    H = w_hh.shape[0]
    h = jnp.zeros((B, H), jnp.float32)
    for t in range(T):
        h = jnp.tanh(x[:, t, :] @ w_ih.T + b_ih[0] + h @ w_hh.T + b_hh[0])
    return h @ w_fc.T + b_fc[0]


if __name__ == "__main__":
    # Small shapes consistent with SimpleRNN forward: (batch, seq, input_size)
    B, T, I, H, O = 2, 8, 4, 32, 1

    key = jax.random.PRNGKey(0)
    k_x, k_wih, k_whh, k_bih, k_bhh, k_wfc, k_bfc = jax.random.split(key, 7)

    scale = 1.0 / jnp.sqrt(H)  # PyTorch nn.RNN / nn.Linear uniform init scale
    x = jax.random.normal(k_x, (B, T, I), jnp.float32)
    w_ih = jax.random.uniform(k_wih, (H, I), jnp.float32, -scale, scale)
    w_hh = jax.random.uniform(k_whh, (H, H), jnp.float32, -scale, scale)
    b_ih = jax.random.uniform(k_bih, (1, H), jnp.float32, -scale, scale)
    b_hh = jax.random.uniform(k_bhh, (1, H), jnp.float32, -scale, scale)
    w_fc = jax.random.uniform(k_wfc, (O, H), jnp.float32, -scale, scale)
    b_fc = jax.random.uniform(k_bfc, (1, O), jnp.float32, -scale, scale)

    # t_tile=4 -> 2 sequential time-grid steps, exercising the VMEM-carried h.
    out = simple_rnn_forward(x, w_ih, w_hh, b_ih, b_hh, w_fc, b_fc, t_tile=4)
    out = jax.block_until_ready(out)

    ref = reference_forward(x, w_ih, w_hh, b_ih, b_hh, w_fc, b_fc)
    assert out.shape == (B, O)
    assert jnp.allclose(out, ref, atol=1e-5, rtol=1e-5), (out, ref)

    print("KERNEL_OK")
</pallas_src>

<mosaic_0001>
module attributes {stable_mosaic.version = 11 : i64} {
  func.func @rnn_kernel(%arg0: i32, %arg1: i32, %arg2: memref<4x8x128xf32, #tpu.memory_space<vmem>>, %arg3: memref<128x128xf32, #tpu.memory_space<vmem>>, %arg4: memref<128x128xf32, #tpu.memory_space<vmem>>, %arg5: memref<1x128xf32, #tpu.memory_space<vmem>>, %arg6: memref<128x128xf32, #tpu.memory_space<vmem>>, %arg7: memref<1x128xf32, #tpu.memory_space<vmem>>, %arg8: memref<8x128xf32, #tpu.memory_space<vmem>>, %arg9: memref<8x128xf32, #tpu.memory_space<vmem>>, %arg10: memref<4x8x128xf32, #tpu.memory_space<vmem>>) attributes {dimension_semantics = [#tpu.dimension_semantics<parallel>, #tpu.dimension_semantics<arbitrary>], iteration_bounds = array<i64: 1, 2>, scalar_prefetch = 0 : i64, scratch_operands = 2 : i64, tpu.core_type = #tpu.core_type<tc>, window_params = [{transform_indices = @transform_0, window_bounds = array<i64: 4, 8, 128>}, {pipeline_mode = #tpu.pipeline_mode<synchronous>, transform_indices = @transform_1, window_bounds = array<i64: 128, 128>}, {pipeline_mode = #tpu.pipeline_mode<synchronous>, transform_indices = @transform_2, window_bounds = array<i64: 128, 128>}, {pipeline_mode = #tpu.pipeline_mode<synchronous>, transform_indices = @transform_3, window_bounds = array<i64: 1, 128>}, {pipeline_mode = #tpu.pipeline_mode<synchronous>, transform_indices = @transform_4, window_bounds = array<i64: 128, 128>}, {pipeline_mode = #tpu.pipeline_mode<synchronous>, transform_indices = @transform_5, window_bounds = array<i64: 1, 128>}, {transform_indices = @transform_6, window_bounds = array<i64: 8, 128>}]} {
    %c0_i32 = arith.constant 0 : i32
    %0 = arith.cmpi eq, %arg1, %c0_i32 : i32
    %1 = arith.extui %0 : i1 to i32
    %c0_i32_0 = arith.constant 0 : i32
    %2 = arith.cmpi ne, %1, %c0_i32_0 : i32
    scf.if %2 {
      %cst_36 = arith.constant 0.000000e+00 : f32
      %41 = vector.broadcast %cst_36 : f32 to vector<8x128xf32>
      %c0_37 = arith.constant 0 : index
      %c0_38 = arith.constant 0 : index
      %42 = vector.load %arg9[%c0_37, %c0_38] : memref<8x128xf32, #tpu.memory_space<vmem>>, vector<8x128xf32>
      tpu.vector_store %arg9[%c0_37, %c0_38], %41 {strides = array<i32>} : memref<8x128xf32, #tpu.memory_space<vmem>>, vector<8x128xf32>,
    } else {
    }
    %c0 = arith.constant 0 : index
    %c0_1 = arith.constant 0 : index
    %c0_2 = arith.constant 0 : index
    %3 = vector.load %arg2[%c0, %c0_1, %c0_2] : memref<4x8x128xf32, #tpu.memory_space<vmem>>, vector<4x8x128xf32>
    %4 = vector.shape_cast %3 : vector<4x8x128xf32> to vector<32x128xf32>
    %c0_3 = arith.constant 0 : index
    %c0_4 = arith.constant 0 : index
    %5 = vector.load %arg3[%c0_3, %c0_4] : memref<128x128xf32, #tpu.memory_space<vmem>>, vector<128x128xf32>
    %cst = arith.constant dense<0.000000e+00> : vector<32x128xf32>
    %6 = tpu.matmul %4, %5, %cst {dimension_numbers = #tpu.dot_dimension_numbers<[1], [0], [0], [1], [0, 0, 1, 1], [], []>} : vector<32x128xf32>, vector<128x128xf32>, vector<32x128xf32> -> vector<32x128xf32>
    %c0_5 = arith.constant 0 : index
    %c0_6 = arith.constant 0 : index
    %7 = vector.load %arg5[%c0_5, %c0_6] : memref<1x128xf32, #tpu.memory_space<vmem>>, vector<1x128xf32>
    %8 = vector.broadcast %7 : vector<1x128xf32> to vector<32x128xf32>
    %9 = arith.addf %6, %8 : vector<32x128xf32>
    %10 = vector.shape_cast %9 : vector<32x128xf32> to vector<4x8x128xf32>
    %c0_7 = arith.constant 0 : index
    %c0_8 = arith.constant 0 : index
    %c0_9 = arith.constant 0 : index
    %11 = vector.load %arg10[%c0_7, %c0_8, %c0_9] : memref<4x8x128xf32, #tpu.memory_space<vmem>>, vector<4x8x128xf32>
    tpu.vector_store %arg10[%c0_7, %c0_8, %c0_9], %10 {strides = array<i32>} : memref<4x8x128xf32, #tpu.memory_space<vmem>>, vector<4x8x128xf32>,
    %c0_10 = arith.constant 0 : index
    %c0_11 = arith.constant 0 : index
    %12 = vector.load %arg9[%c0_10, %c0_11] : memref<8x128xf32, #tpu.memory_space<vmem>>, vector<8x128xf32>
    %c0_12 = arith.constant 0 : index
    %c0_13 = arith.constant 0 : index
    %c0_14 = arith.constant 0 : index
    %13 = vector.load %arg10[%c0_12, %c0_13, %c0_14] : memref<4x8x128xf32, #tpu.memory_space<vmem>>, vector<1x8x128xf32>
    %14 = vector.shape_cast %13 : vector<1x8x128xf32> to vector<8x128xf32>
    %c0_15 = arith.constant 0 : index
    %c0_16 = arith.constant 0 : index
    %15 = vector.load %arg4[%c0_15, %c0_16] : memref<128x128xf32, #tpu.memory_space<vmem>>, vector<128x128xf32>
    %cst_17 = arith.constant dense<0.000000e+00> : vector<8x128xf32>
    %16 = tpu.matmul %12, %15, %cst_17 {dimension_numbers = #tpu.dot_dimension_numbers<[1], [0], [0], [1], [0, 0, 1, 1], [], []>} : vector<8x128xf32>, vector<128x128xf32>, vector<8x128xf32> -> vector<8x128xf32>
    %17 = arith.addf %14, %16 : vector<8x128xf32>
    %18 = math.tanh %17 : vector<8x128xf32>
    %c1 = arith.constant 1 : index
    %c0_18 = arith.constant 0 : index
    %c0_19 = arith.constant 0 : index
    %19 = vector.load %arg10[%c1, %c0_18, %c0_19] : memref<4x8x128xf32, #tpu.memory_space<vmem>>, vector<1x8x128xf32>
    %20 = vector.shape_cast %19 : vector<1x8x128xf32> to vector<8x128xf32>
    %c0_20 = arith.constant 0 : index
    %c0_21 = arith.constant 0 : index
    %21 = vector.load %arg4[%c0_20, %c0_21] : memref<128x128xf32, #tpu.memory_space<vmem>>, vector<128x128xf32>
    %cst_22 = arith.constant dense<0.000000e+00> : vector<8x128xf32>
    %22 = tpu.matmul %18, %21, %cst_22 {dimension_numbers = #tpu.dot_dimension_numbers<[1], [0], [0], [1], [0, 0, 1, 1], [], []>} : vector<8x128xf32>, vector<128x128xf32>, vector<8x128xf32> -> vector<8x128xf32>
    %23 = arith.addf %20, %22 : vector<8x128xf32>
    %24 = math.tanh %23 : vector<8x128xf32>
    %c2 = arith.constant 2 : index
    %c0_23 = arith.constant 0 : index
    %c0_24 = arith.constant 0 : index
    %25 = vector.load %arg10[%c2, %c0_23, %c0_24] : memref<4x8x128xf32, #tpu.memory_space<vmem>>, vector<1x8x128xf32>
    %26 = vector.shape_cast %25 : vector<1x8x128xf32> to vector<8x128xf32>
    %c0_25 = arith.constant 0 : index
    %c0_26 = arith.constant 0 : index
    %27 = vector.load %arg4[%c0_25, %c0_26] : memref<128x128xf32, #tpu.memory_space<vmem>>, vector<128x128xf32>
    %cst_27 = arith.constant dense<0.000000e+00> : vector<8x128xf32>
    %28 = tpu.matmul %24, %27, %cst_27 {dimension_numbers = #tpu.dot_dimension_numbers<[1], [0], [0], [1], [0, 0, 1, 1], [], []>} : vector<8x128xf32>, vector<128x128xf32>, vector<8x128xf32> -> vector<8x128xf32>
    %29 = arith.addf %26, %28 : vector<8x128xf32>
    %30 = math.tanh %29 : vector<8x128xf32>
    %c3 = arith.constant 3 : index
    %c0_28 = arith.constant 0 : index
    %c0_29 = arith.constant 0 : index
    %31 = vector.load %arg10[%c3, %c0_28, %c0_29] : memref<4x8x128xf32, #tpu.memory_space<vmem>>, vector<1x8x128xf32>
    %32 = vector.shape_cast %31 : vector<1x8x128xf32> to vector<8x128xf32>
    %c0_30 = arith.constant 0 : index
    %c0_31 = arith.constant 0 : index
    %33 = vector.load %arg4[%c0_30, %c0_31] : memref<128x128xf32, #tpu.memory_space<vmem>>, vector<128x128xf32>
    %cst_32 = arith.constant dense<0.000000e+00> : vector<8x128xf32>
    %34 = tpu.matmul %30, %33, %cst_32 {dimension_numbers = #tpu.dot_dimension_numbers<[1], [0], [0], [1], [0, 0, 1, 1], [], []>} : vector<8x128xf32>, vector<128x128xf32>, vector<8x128xf32> -> vector<8x128xf32>
    %35 = arith.addf %32, %34 : vector<8x128xf32>
    %36 = math.tanh %35 : vector<8x128xf32>
    %c0_33 = arith.constant 0 : index
    %c0_34 = arith.constant 0 : index
    %37 = vector.load %arg9[%c0_33, %c0_34] : memref<8x128xf32, #tpu.memory_space<vmem>>, vector<8x128xf32>
    tpu.vector_store %arg9[%c0_33, %c0_34], %36 {strides = array<i32>} : memref<8x128xf32, #tpu.memory_space<vmem>>, vector<8x128xf32>,
    %c1_i32 = arith.constant 1 : i32
    %38 = arith.cmpi eq, %arg1, %c1_i32 : i32
    %39 = arith.extui %38 : i1 to i32
    %c0_i32_35 = arith.constant 0 : i32
    %40 = arith.cmpi ne, %39, %c0_i32_35 : i32
    scf.if %40 {
      %c0_36 = arith.constant 0 : index
      %c0_37 = arith.constant 0 : index
      %41 = vector.load %arg6[%c0_36, %c0_37] : memref<128x128xf32, #tpu.memory_space<vmem>>, vector<128x128xf32>
      %cst_38 = arith.constant dense<0.000000e+00> : vector<8x128xf32>
      %42 = tpu.matmul %36, %41, %cst_38 {dimension_numbers = #tpu.dot_dimension_numbers<[1], [0], [0], [1], [0, 0, 1, 1], [], []>} : vector<8x128xf32>, vector<128x128xf32>, vector<8x128xf32> -> vector<8x128xf32>
      %c0_39 = arith.constant 0 : index
      %c0_40 = arith.constant 0 : index
      %43 = vector.load %arg7[%c0_39, %c0_40] : memref<1x128xf32, #tpu.memory_space<vmem>>, vector<1x128xf32>
      %44 = vector.broadcast %43 : vector<1x128xf32> to vector<8x128xf32>
      %45 = arith.addf %42, %44 : vector<8x128xf32>
      %c0_41 = arith.constant 0 : index
      %c0_42 = arith.constant 0 : index
      %46 = vector.load %arg8[%c0_41, %c0_42] : memref<8x128xf32, #tpu.memory_space<vmem>>, vector<8x128xf32>
      tpu.vector_store %arg8[%c0_41, %c0_42], %45 {strides = array<i32>} : memref<8x128xf32, #tpu.memory_space<vmem>>, vector<8x128xf32>,
    } else {
    }
    return
  }
  func.func @transform_0(%arg0: i32, %arg1: i32) -> (i32, i32, i32) {
    %c0_i32 = arith.constant 0 : i32
    %c0_i32_0 = arith.constant 0 : i32
    return %arg1, %arg0, %c0_i32 : i32, i32, i32
  }
  func.func @transform_1(%arg0: i32, %arg1: i32) -> (i32, i32) {
    %c0_i32 = arith.constant 0 : i32
    %c0_i32_0 = arith.constant 0 : i32
    %c0_i32_1 = arith.constant 0 : i32
    return %c0_i32, %c0_i32_0 : i32, i32
  }
  func.func @transform_2(%arg0: i32, %arg1: i32) -> (i32, i32) {
    %c0_i32 = arith.constant 0 : i32
    %c0_i32_0 = arith.constant 0 : i32
    %c0_i32_1 = arith.constant 0 : i32
    return %c0_i32, %c0_i32_0 : i32, i32
  }
  func.func @transform_3(%arg0: i32, %arg1: i32) -> (i32, i32) {
    %c0_i32 = arith.constant 0 : i32
    %c0_i32_0 = arith.constant 0 : i32
    %c0_i32_1 = arith.constant 0 : i32
    return %c0_i32, %c0_i32_0 : i32, i32
  }
  func.func @transform_4(%arg0: i32, %arg1: i32) -> (i32, i32) {
    %c0_i32 = arith.constant 0 : i32
    %c0_i32_0 = arith.constant 0 : i32
    %c0_i32_1 = arith.constant 0 : i32
    return %c0_i32, %c0_i32_0 : i32, i32
  }
  func.func @transform_5(%arg0: i32, %arg1: i32) -> (i32, i32) {
    %c0_i32 = arith.constant 0 : i32
    %c0_i32_0 = arith.constant 0 : i32
    %c0_i32_1 = arith.constant 0 : i32
    return %c0_i32, %c0_i32_0 : i32, i32
  }
  func.func @transform_6(%arg0: i32, %arg1: i32) -> (i32, i32) {
    %c0_i32 = arith.constant 0 : i32
    %c0_i32_0 = arith.constant 0 : i32
    return %arg0, %c0_i32 : i32, i32
  }
}

</mosaic_0001>

<bundles_post_ra>
// kernel: tpu_custom_call.1
= control target key start
LH: loop header
LB: loop body
LE: loop exit
PB: predicated region body
PF: predicated region fallthrough
CT: control target
= control target key end

     0   :  { %s1248_s0 = inlined_call_operand.hbm [shape: f32[8,8,128], index: 0, kind: input, shape index: {}]   ;;  %s1249_s1 = inlined_call_operand.hbm [shape: f32[128,128], index: 1, kind: input, shape index: {}]   ;;  %s1250_s2 = inlined_call_operand.hbm [shape: f32[128,128], index: 2, kind: input, shape index: {}]   ;;  %s1251_s3 = inlined_call_operand.vmem [shape: f32[1,128], index: 3, kind: input, shape index: {}]   ;;  %s1252_s4 = inlined_call_operand.hbm [shape: f32[128,128], index: 4, kind: input, shape index: {}]   ;;  %s1253_s5 = inlined_call_operand.vmem [shape: f32[1,128], index: 5, kind: input, shape index: {}]   ;;  %s1254_s6 = inlined_call_operand.hbm [shape: f32[8,128], index: 6, kind: output, shape index: {}]  }
   0x1   :  { %1257 = sst [smem:[#allocation17_spill]] %s1249_s1 }
   0x2   :  { %11 = vsyncpa [#allocation5], 0 }
   0x3   :  { %13 = vsyncpa [#allocation5 + $0x1], 0 }
   0x4   :  { %14 = vsyncpa [#allocation8], 0 }
   0x5   :  { %15 = vsyncpa [#allocation11], 0 }
   0x6   :  { %16 = vsyncpa [#allocation6], 0  ;;  %s1035_s21 = smov 0   ;;  %s1037_s22 = smov 0  }
   0x7   :  { %s1039_s23 = smov 0   ;;  %s1041_s24 = smov 0  }
   0x8   :  { %s1043_s25 = smov 0   ;;  %s1045_s26 = smov 0  }
   0x9 LB: > { %s1255_s27 = sadd.s32 4294967295, %s991_s26   ;;  %p56_p0 = scmp.ne.s32.totalorder %s975_s22, %s971_s21  ;;  %s991_s26 = sphi %s1045_s26, %s22_s26   ;;  %s987_s25 = sphi %s1043_s25, %s1270_s25   ;;  %s983_s24 = sphi %s1041_s24, %s1269_s24   ;;  %s979_s23 = sphi %s1039_s23, %s1268_s23   ;;  %s975_s22 = sphi %s1037_s22, %s1267_s22   ;;  %s971_s21 = sphi %s1035_s21, %s1266_s21  }
   0xa   : > { %p1067_p1 = scmp.eq.s32.totalorder %s1255_s27, 0  ;;  %p655_p2 = scmp.ge.s32.totalorder %s991_s26, 1 }
   0xb   : > { %p198_p3 = scmp.lt.s32.totalorder %s991_s26, 3  ;;  %s1260_s1 = sld [smem:[#allocation17_spill]] }
   0xc   : > { %p1075_p4 = por %p1067_p1, %p56_p0  ;;  %s993_s10 = smov [#allocation7]  }
   0xd   : > { %p1082_p5 = pnand %p655_p2, %p198_p3  ;;  %s211_s11 = sshll.u32 %s993_s10, 4  ;;  %s212_s11 = int_to_ptr.vmem [resolvable:$true] %s211_s11 }
   0xe   : > { %s223_s15 = sshll.u32 %s1250_s2, 4  ;;  %s1256_s16 = smov 128   ;;  %s224_s15 = int_to_ptr.hbm [resolvable:$true] %s223_s15 }
   0xf   : > { %p693_p6 = pneg %p1082_p5  ;;  %s995_s17 = smov 8  }
  0x10   : > { %s996_s18 = smov [#allocation9]   ;;  %s240_s30 = sshll.u32 %s1252_s4, 4  ;;  %s241_s30 = int_to_ptr.hbm [resolvable:$true] %s240_s30 }
  0x11   : > { %s209_s8 = sshll.u32 %s1260_s1, 4  ;;  %p1090_p7 = pnand %p693_p6, %p1067_p1  ;;  %s210_s8 = int_to_ptr.hbm [resolvable:$true] %s209_s8 }
  0x12   : > { %s225_s19 = sshll.u32 %s996_s18, 4  ;;  %s997_s7 = smov [#allocation10]   ;;  %s226_s19 = int_to_ptr.vmem [resolvable:$true] %s225_s19 }
  0x13   : > { %696 = dma.hbm_to_vmem [thread:$0]  (!%p1090_p7), %s210_s8, 2048, %s212_s11, [#allocation8], %s1256_s16, %s1256_s16, %s995_s17  }
  0x14   : > { %699 = dma.hbm_to_vmem [thread:$0]  (!%p1090_p7), %s224_s15, 2048, %s226_s19, [#allocation8], %s1256_s16, %s1256_s16, %s995_s17  }
  0x15   : > { %s242_s8 = sshll.u32 %s997_s7, 4  ;;  %s31_s10 = sadd.s32 1, %s987_s25  ;;  %s243_s8 = int_to_ptr.vmem [resolvable:$true] %s242_s8 }
  0x16   : > { %702 = dma.hbm_to_vmem [thread:$0]  (!%p1090_p7), %s241_s30, 2048, %s243_s8, [#allocation11], %s1256_s16, %s1256_s16, %s995_s17  }
  0x17   : > { %p32_p8 = scmp.ge.s32.totalorder %s31_s10, 2  ;;  %p50_p9 = scmp.ne.s32.totalorder %s979_s23, %s975_s22 }
  0x18   : > { %p51_p10 = scmp.eq.s32.totalorder %s991_s26, 0  ;;  %s43_s11 = sadd.s32 1, %s979_s23 }
  0x19   : > { %s1272_s10 = smov (%p32_p8, %s31_s10), 0  ;;  %s259_s15 = sand.u32 1, %s979_s23  }
  0x1a   : > { %p1122_p11 = por %p51_p10, %p50_p9  ;;  %s38_s14 = ssub.s32 %s987_s25, %s1272_s10 }
  0x1b   : > { %p41_p12 = scmp.eq.s32.totalorder %s38_s14, 0  ;;  %p710_p13 = scmp.lt.s32.totalorder %s991_s26, 2 }
  0x1c   : > { %s660_s12 = sshll.u32 %s259_s15, 5  ;;  %s674_s18 = sshll.u32 %s987_s25, 5 }
  0x1d   : > { %s1132_s19 = scalar_select %p41_p12, %s979_s23, %s43_s11  }
  0x1e   : > { %s269_s30 = scalar_lea.hbm %s1248_s0, %s674_s18  ;;  %s263_s8 = scalar_lea.vmem [#allocation4], %s660_s12 }
  0x1f   : > { %s270_s7 = sshll.u32 %s269_s30, 4  ;;  %s272_s27 = sshll.u32 %s263_s8, 4  ;;  %s271_s7 = int_to_ptr.hbm [resolvable:$true] %s270_s7  ;;  %s273_s27 = int_to_ptr.vmem [resolvable:$true] %s272_s27 }
  0x20   : > { %p704_p0 = pnand %p710_p13, %p1122_p11  ;;  %s260_s16 = scalar_lea.sflag [#allocation5], %s259_s15 }
  0x21   : > { %s1264_s1 = smov 128   ;;  %284 = sbr.rel (%p1082_p5) target bundleno = 806 (0x326), region = 44 }
  0x22   : > { %706 = dma.hbm_to_vmem [thread:$0]  (!%p704_p0), %s271_s7, 512, %s273_s27, %s260_s16, %s1264_s1, %s1264_s1, %s995_s17  }
  0x23   : > { %s286_s11 = sand.u32 (!%p1082_p5), 1, %s975_s22  }
  0x24   : > { %s664_s14 = sshll.u32 (!%p1082_p5), %s286_s11, 5  ;;  %s287_s18 = scalar_lea.sflag (!%p1082_p5), [#allocation5], %s286_s11 }
  0x25   : > { %s1145_s20 = scalar_lea.vmem (!%p1082_p5), [#allocation4], %s664_s14 }
  0x26   : > { %954 = dma.done.wait (%p1075_p4), %s287_s18, 512  }
  0x27   : > { %956 = vsyncadd (%p1075_p4), %s287_s18, 4294966784 }
  0x28   : > { %958 = dma.done.wait (%p1067_p1), [#allocation8], 4096  }
  0x29   : > { %960 = vsyncadd (%p1067_p1), [#allocation8], 4294963200 }
  0x2a   : > { %962 = dma.done.wait (%p1067_p1), [#allocation11], 2048  }
  0x2b   : > { %964 = vsyncadd (%p1067_p1), [#allocation11], 4294965248  ;;  %p668_p2 = scmp.ne.s32.totalorder %s983_s24, 0 }
  0x2d   : > { %334 = sbr.rel (%p668_p2) target bundleno = 52 (0x34), region = 64 }
  0x32   : > { %v998_v0 = vmov 0.0  }
  0x33   : > { %335 = vst [vmem:[#allocation2] sm:$0xff] %v998_v0 }
  0x34 PF: > { %v355_v1 = vld [vmem:[#allocation7 + $0x78] sm:$0xff]  ;;  %v354_v2 = vld [vmem:[#allocation7 + $0x70] sm:$0xff]  ;;  %v353_v5 = vld [vmem:[#allocation7 + $0x68] sm:$0xff]  ;;  %p669_p1 = scmp.ne.s32.totalorder %s983_s24, 1 }
  0x35   : > { %v1160_v3 = vld [vmem:[#allocation9 + $0x78] sm:$0xff]  ;;  %360 = vmatpush.msra.mxu0 %v355_v1  ;;  %v1163_v4 = vld [vmem:[#allocation9 + $0x70] sm:$0xff]  ;;  %v1165_v6 = vld [vmem:[#allocation9 + $0x68] sm:$0xff] }
  0x36   : > { %411 = vmatpush.msra.mxu1 %v1160_v3  ;;  %435 = vmatpush.msra.mxu2 %v1160_v3  ;;  %v352_v7 = vld [vmem:[#allocation7 + $0x60] sm:$0xff]  ;;  %v351_v9 = vld [vmem:[#allocation7 + $0x58] sm:$0xff]  ;;  %v350_v11 = vld [vmem:[#allocation7 + $0x50] sm:$0xff] }
  0x37   : > { %459 = vmatpush.msra.mxu3 %v1160_v3  ;;  %361 = vmatpush.msra.mxu0 %v354_v2  ;;  %v1170_v8 = vld [vmem:[#allocation9 + $0x60] sm:$0xff]  ;;  %v1175_v10 = vld [vmem:[#allocation9 + $0x58] sm:$0xff]  ;;  %v1180_v12 = vld [vmem:[#allocation9 + $0x50] sm:$0xff] }
  0x38   : > { %412 = vmatpush.msra.mxu1 %v1163_v4  ;;  %436 = vmatpush.msra.mxu2 %v1163_v4  ;;  %v349_v13 = vld [vmem:[#allocation7 + $0x48] sm:$0xff]  ;;  %v348_v15 = vld [vmem:[#allocation7 + $0x40] sm:$0xff]  ;;  %v347_v17 = vld [vmem:[#allocation7 + $0x38] sm:$0xff] }
  0x39   : > { %460 = vmatpush.msra.mxu3 %v1163_v4  ;;  %362 = vmatpush.msra.mxu0 %v353_v5  ;;  %v1185_v14 = vld [vmem:[#allocation9 + $0x48] sm:$0xff]  ;;  %v1190_v16 = vld [vmem:[#allocation9 + $0x40] sm:$0xff]  ;;  %v1195_v18 = vld [vmem:[#allocation9 + $0x38] sm:$0xff] }
  0x3a   : > { %413 = vmatpush.msra.mxu1 %v1165_v6  ;;  %437 = vmatpush.msra.mxu2 %v1165_v6  ;;  %v346_v19 = vld [vmem:[#allocation7 + $0x30] sm:$0xff]  ;;  %v345_v21 = vld [vmem:[#allocation7 + $0x28] sm:$0xff]  ;;  %v344_v23 = vld [vmem:[#allocation7 + $0x20] sm:$0xff] }
  0x3b   : > { %461 = vmatpush.msra.mxu3 %v1165_v6  ;;  %363 = vmatpush.msra.mxu0 %v352_v7  ;;  %v401_v20 = vld [vmem:[#allocation9 + $0x30] sm:$0xff]  ;;  %v400_v22 = vld [vmem:[#allocation9 + $0x28] sm:$0xff]  ;;  %v399_v24 = vld [vmem:[#allocation9 + $0x20] sm:$0xff] }
  0x3c   : > { %414 = vmatpush.msra.mxu1 %v1170_v8  ;;  %438 = vmatpush.msra.mxu2 %v1170_v8  ;;  %v343_v25 = vld [vmem:[#allocation7 + $0x18] sm:$0xff]  ;;  %v342_v27 = vld [vmem:[#allocation7 + $0x10] sm:$0xff]  ;;  %v341_v29 = vld [vmem:[#allocation7 + $0x8] sm:$0xff] }
  0x3d   : > { %462 = vmatpush.msra.mxu3 %v1170_v8  ;;  %364 = vmatpush.msra.mxu0 %v351_v9  ;;  %v398_v26 = vld [vmem:[#allocation9 + $0x18] sm:$0xff]  ;;  %v397_v28 = vld [vmem:[#allocation9 + $0x10] sm:$0xff]  ;;  %v396_v30 = vld [vmem:[#allocation9 + $0x8] sm:$0xff] }
  0x3e   : > { %415 = vmatpush.msra.mxu1 %v1175_v10  ;;  %439 = vmatpush.msra.mxu2 %v1175_v10  ;;  %v340_v31 = vld [vmem:[#allocation7] sm:$0xff]  ;;  %v393_v34 = vld [vmem:[#allocation2] sm:$0xff]  ;;  %v337_v35 = vld [vmem:[%s1145_s20 + $0x8] sm:$0xff] }
  0x3f   : > { %463 = vmatpush.msra.mxu3 %v1175_v10  ;;  %365 = vmatpush.msra.mxu0 %v350_v11  ;;  %v395_v32 = vld [vmem:[#allocation9] sm:$0xff]  ;;  %v771_v36 = vld [vmem:[%s1251_s3] ss:$0 sm:$0xff]  ;;  %v338_v42 = vld [vmem:[%s1145_s20 + $0x10] sm:$0xff] }
  0x40   : > { %416 = vmatpush.msra.mxu1 %v1180_v12  ;;  %440 = vmatpush.msra.mxu2 %v1180_v12  ;;  %v336_v33 = vld [vmem:[%s1145_s20] sm:$0xff]  ;;  %v339_v48 = vld [vmem:[%s1145_s20 + $0x18] sm:$0xff] }
  0x41   : > { %464 = vmatpush.msra.mxu3 %v1180_v12  ;;  %366 = vmatpush.msra.mxu0 %v349_v13 }
  0x42   : > { %417 = vmatpush.msra.mxu1 %v1185_v14  ;;  %441 = vmatpush.msra.mxu2 %v1185_v14 }
  0x43   : > { %465 = vmatpush.msra.mxu3 %v1185_v14  ;;  %367 = vmatpush.msra.mxu0 %v348_v15 }
  0x44   : > { %418 = vmatpush.msra.mxu1 %v1190_v16  ;;  %442 = vmatpush.msra.mxu2 %v1190_v16 }
  0x45   : > { %466 = vmatpush.msra.mxu3 %v1190_v16  ;;  %368 = vmatpush.msra.mxu0 %v347_v17 }
  0x46   : > { %419 = vmatpush.msra.mxu1 %v1195_v18  ;;  %443 = vmatpush.msra.mxu2 %v1195_v18 }
  0x47   : > { %467 = vmatpush.msra.mxu3 %v1195_v18  ;;  %369 = vmatpush.msra.mxu0 %v346_v19 }
  0x48   : > { %420 = vmatpush.msra.mxu1 %v401_v20  ;;  %444 = vmatpush.msra.mxu2 %v401_v20 }
  0x49   : > { %468 = vmatpush.msra.mxu3 %v401_v20  ;;  %370 = vmatpush.msra.mxu0 %v345_v21 }
  0x4a   : > { %421 = vmatpush.msra.mxu1 %v400_v22  ;;  %445 = vmatpush.msra.mxu2 %v400_v22 }
  0x4b   : > { %469 = vmatpush.msra.mxu3 %v400_v22  ;;  %371 = vmatpush.msra.mxu0 %v344_v23 }
  0x4c   : > { %422 = vmatpush.msra.mxu1 %v399_v24  ;;  %446 = vmatpush.msra.mxu2 %v399_v24 }
  0x4d   : > { %470 = vmatpush.msra.mxu3 %v399_v24  ;;  %372 = vmatpush.msra.mxu0 %v343_v25 }
  0x4e   : > { %423 = vmatpush.msra.mxu1 %v398_v26  ;;  %447 = vmatpush.msra.mxu2 %v398_v26 }
  0x4f   : > { %471 = vmatpush.msra.mxu3 %v398_v26  ;;  %373 = vmatpush.msra.mxu0 %v342_v27 }
  0x50   : > { %424 = vmatpush.msra.mxu1 %v397_v28  ;;  %448 = vmatpush.msra.mxu2 %v397_v28 }
  0x51   : > { %472 = vmatpush.msra.mxu3 %v397_v28  ;;  %374 = vmatpush.msra.mxu0 %v341_v29 }
  0x52   : > { %425 = vmatpush.msra.mxu1 %v396_v30  ;;  %449 = vmatpush.msra.mxu2 %v396_v30 }
  0x53   : > { %473 = vmatpush.msra.mxu3 %v396_v30  ;;  %375 = vmatpush.msra.mxu0 %v340_v31 }
  0x54   : > { %426 = vmatpush.msra.mxu1 %v395_v32  ;;  %376 = vmatmul.f32.vlgmr.msra.gmra.mxu0 %v336_v33 }
  0x55   : > { %427 = vmatmul.f32.vlgmr.msra.gmra.mxu1 %v393_v34  ;;  %450 = vmatpush.msra.mxu2 %v395_v32 }
  0x56   : > { %474 = vmatpush.msra.mxu3 %v395_v32  ;;  %483 = vmatpush.msrb.mxu0 %v1160_v3 }
  0x58   : > { %484 = vmatpush.msrb.mxu0 %v1163_v4 }
  0x5a   : > { %485 = vmatpush.msrb.mxu0 %v1165_v6 }
  0x5c   : > { %486 = vmatpush.msrb.mxu0 %v1170_v8 }
  0x5d   : > { %379 = vmatmul.f32.gmra.mxu0 %v337_v35 }
  0x5e   : > { %487 = vmatpush.msrb.mxu0 %v1175_v10 }
  0x60   : > { %488 = vmatpush.msrb.mxu0 %v1180_v12 }
  0x62   : > { %489 = vmatpush.msrb.mxu0 %v1185_v14 }
  0x64   : > { %490 = vmatpush.msrb.mxu0 %v1190_v16 }
  0x65   : > { %382 = vmatmul.f32.gmra.mxu0 %v338_v42 }
  0x66   : > { %491 = vmatpush.msrb.mxu0 %v1195_v18 }
  0x68   : > { %492 = vmatpush.msrb.mxu0 %v401_v20 }
  0x6a   : > { %493 = vmatpush.msrb.mxu0 %v400_v22 }
  0x6c   : > { %494 = vmatpush.msrb.mxu0 %v399_v24 }
  0x6d   : > { %385 = vmatmul.f32.gmra.mxu0 %v339_v48 }
  0x6e   : > { %495 = vmatpush.msrb.mxu0 %v398_v26 }
  0x70   : > { %496 = vmatpush.msrb.mxu0 %v397_v28 }
  0x72   : > { %497 = vmatpush.msrb.mxu0 %v396_v30 }
  0x74   : > { %498 = vmatpush.msrb.mxu0 %v395_v32 }
  0xd1   : > { %v377_v37 = vpop.f32.mrf.mxu0 }
  0xd2   : > { %v428_v38 = vpop.f32.mrf.mxu1  ;;  %v378_v39 = vadd.f32 %v771_v36, %v377_v37 }
  0xd4   : > { %v431_v40 = vadd.f32 %v428_v38, %v378_v39 }
  0xd6   : > { %772 = vtanh.f32 %v431_v40 }
  0xda   : > { %v380_v43 = vpop.f32.mrf.mxu0 }
  0xdb   : > { %v381_v44 = vadd.f32 %v771_v36, %v380_v43 }
  0xdc   : > { %v773_v41 = vpop.eup %772 }
  0xdd   : > { %451 = vmatmul.f32.vlgmr.msra.gmra.mxu2 %v773_v41 }
  0xe2   : > { %v383_v49 = vpop.f32.mrf.mxu0 }
  0xe3   : > { %v384_v50 = vadd.f32 %v771_v36, %v383_v49 }
  0xea   : > { %v386_v54 = vpop.f32.mrf.mxu0 }
  0xeb   : > { %v387_v55 = vadd.f32 %v771_v36, %v386_v54 }
 0x160   : > { %v452_v45 = vpop.f32.mrf.mxu2 }
 0x161   : > { %v455_v46 = vadd.f32 %v452_v45, %v381_v44 }
 0x163   : > { %774 = vtanh.f32 %v455_v46 }
 0x169   : > { %v775_v47 = vpop.eup %774 }
 0x16a   : > { %475 = vmatmul.f32.vlgmr.msra.gmra.mxu3 %v775_v47 }
 0x1ed   : > { %v476_v51 = vpop.f32.mrf.mxu3 }
 0x1ee   : > { %v479_v52 = vadd.f32 %v476_v51, %v384_v50 }
 0x1f0   : > { %776 = vtanh.f32 %v479_v52 }
 0x1f6   : > { %v777_v53 = vpop.eup %776 }
 0x1f7   : > { %499 = vmatmul.f32.vlgmr.msrb.gmra.mxu0 %v777_v53 }
 0x274   : > { %v500_v56 = vpop.f32.mrf.mxu0 }
 0x275   : > { %v503_v57 = vadd.f32 %v500_v56, %v387_v55 }
 0x277   : > { %778 = vtanh.f32 %v503_v57 }
 0x27a   : > { %509 = sbr.rel (%p669_p1) target bundleno = 800 (0x320), region = 68 }
 0x27d   : > { %v779_v58 = vpop.eup %778 }
 0x27e   : > { %505 = vst [vmem:[#allocation2] sm:$0xff] %v779_v58 }
 0x27f   : > { %v525_v59 = vld [vmem:[#allocation10 + $0x78] sm:$0xff]  ;;  %v524_v60 = vld [vmem:[#allocation10 + $0x70] sm:$0xff]  ;;  %v523_v61 = vld [vmem:[#allocation10 + $0x68] sm:$0xff] }
 0x280   : > { %530 = vmatpush.msra.mxu0 %v525_v59  ;;  %v522_v62 = vld [vmem:[#allocation10 + $0x60] sm:$0xff]  ;;  %v521_v63 = vld [vmem:[#allocation10 + $0x58] sm:$0xff]  ;;  %v520_v0 = vld [vmem:[#allocation10 + $0x50] sm:$0xff] }
 0x281   : > { %v519_v1 = vld [vmem:[#allocation10 + $0x48] sm:$0xff]  ;;  %v518_v2 = vld [vmem:[#allocation10 + $0x40] sm:$0xff]  ;;  %v517_v3 = vld [vmem:[#allocation10 + $0x38] sm:$0xff] }
 0x282   : > { %531 = vmatpush.msra.mxu0 %v524_v60  ;;  %v516_v4 = vld [vmem:[#allocation10 + $0x30] sm:$0xff]  ;;  %v515_v5 = vld [vmem:[#allocation10 + $0x28] sm:$0xff]  ;;  %v514_v6 = vld [vmem:[#allocation10 + $0x20] sm:$0xff] }
 0x283   : > { %v513_v7 = vld [vmem:[#allocation10 + $0x18] sm:$0xff]  ;;  %v512_v8 = vld [vmem:[#allocation10 + $0x10] sm:$0xff]  ;;  %v511_v9 = vld [vmem:[#allocation10 + $0x8] sm:$0xff] }
 0x284   : > { %532 = vmatpush.msra.mxu0 %v523_v61  ;;  %v510_v10 = vld [vmem:[#allocation10] sm:$0xff]  ;;  %v780_v11 = vld [vmem:[%s1253_s5] ss:$0 sm:$0xff] }
 0x286   : > { %533 = vmatpush.msra.mxu0 %v522_v62 }
 0x288   : > { %534 = vmatpush.msra.mxu0 %v521_v63 }
 0x28a   : > { %535 = vmatpush.msra.mxu0 %v520_v0 }
 0x28c   : > { %536 = vmatpush.msra.mxu0 %v519_v1 }
 0x28e   : > { %537 = vmatpush.msra.mxu0 %v518_v2 }
 0x290   : > { %538 = vmatpush.msra.mxu0 %v517_v3 }
 0x292   : > { %539 = vmatpush.msra.mxu0 %v516_v4 }
 0x294   : > { %540 = vmatpush.msra.mxu0 %v515_v5 }
 0x296   : > { %541 = vmatpush.msra.mxu0 %v514_v6 }
 0x298   : > { %542 = vmatpush.msra.mxu0 %v513_v7 }
 0x29a   : > { %543 = vmatpush.msra.mxu0 %v512_v8 }
 0x29c   : > { %544 = vmatpush.msra.mxu0 %v511_v9 }
 0x29e   : > { %545 = vmatpush.msra.mxu0 %v510_v10 }
 0x29f   : > { %546 = vmatmul.f32.vlgmr.msra.gmra.mxu0 %v779_v58 }
 0x31c   : > { %v547_v12 = vpop.f32.mrf.mxu0 }
 0x31d   : > { %v548_v13 = vadd.f32 %v780_v11, %v547_v12 }
 0x31f   : > { %550 = vst [vmem:[#allocation12] sm:$0xff] %v548_v13 }
 0x320 PF: > { %s1265_s29 = sadd.s32 4294967295, %s991_s26   ;;  %s561_s17 = sshll.u32 %s1254_s6, 4  ;;  %s562_s17 = int_to_ptr.hbm [resolvable:$true] %s561_s17 }
 0x321   : > { %p714_p3 = scmp.eq.s32.totalorder %s1265_s29, 1  ;;  %s999_s13 = smov [#allocation12]  }
 0x322   : > { %s559_s15 = sshll.u32 %s999_s13, 4  ;;  %s560_s15 = int_to_ptr.vmem [resolvable:$true] %s559_s15 }
 0x323   : > { %690 = dma.vmem_to_hbm [thread:$0]  (%p714_p3), %s560_s15, 128, %s562_s17, [#allocation6]  }
 0x324   : > { %966 = dma.done.wait (%p714_p3), [#allocation6], 128  }
 0x325   : > { %968 = vsyncadd (%p714_p3), [#allocation6], 4294967168 }
 0x326 PF: > { %s22_s26 = sadd.s32 1, %s991_s26   ;;  %s1266_s21 = smov %s975_s22 }
 0x327   : > { %p19_p4 = scmp.ge.s32.totalorder %s22_s26, 4   ;;  %s1267_s22 = smov %s979_s23 }
 0x328   : > { %s1268_s23 = smov %s1132_s19  ;;  %s1269_s24 = smov %s987_s25 }
 0x329   : > { %s1270_s25 = smov %s1272_s10  ;;  %21 = sbr.rel (!%p19_p4) target bundleno = 9 (0x9), region = 105 }
 0x32e   :  { %575 = vsyncpa [#allocation5], 1 }
 0x32f   :  { %577 = vsyncpa [#allocation5 + $0x1], 1 }
 0x330   :  { %578 = vsyncpa [#allocation8], 1 }
 0x331   :  { %579 = vsyncpa [#allocation11], 1 }
 0x332   :  { %580 = vsyncpa [#allocation6], 1 }
 0x333   :  { %582 = vsyncpa [#allocation6 + $0x1], 1 }

</bundles_post_ra>
